<compile_context>
chip_gen: v7x
topology: tpu7x:2x2x1
jax: 0.10.0
libtpu: 0.0.40
codegen_flags: <defaults>
</compile_context>

<pallas_src>
import collections

import jax
import jax.numpy as jnp
from jax import lax
from jax.experimental import pallas as pl
from jax.experimental.pallas import tpu as pltpu

RayBundle = collections.namedtuple(
    "RayBundle", ["origins", "directions", "sample_points", "sample_lengths"]
)


def _round_up(x, m):
    return ((x + m - 1) // m) * m


def _make_sampler_kernel(min_depth, step, p_pad):
    """Kernel factory closing over the static linspace parameters."""

    def kernel(o_ref, d_ref, pts_ref):
        # o_ref, d_ref : (3, TN)        VMEM  (components on sublanes, rays on lanes)
        # pts_ref      : (3, Ppad, TN)  VMEM  (rays on the 128-lane axis)
        z = (
            jnp.float32(min_depth)
            + jnp.float32(step)
            * lax.broadcasted_iota(jnp.int32, (p_pad, 1), 0).astype(jnp.float32)
        )  # (Ppad, 1) -- depth along the sublane axis
        for c in range(3):  # tiny static unroll over xyz
            o_row = o_ref[c : c + 1, :]  # (1, TN) static ref-slice -> cheap row read
            d_row = d_ref[c : c + 1, :]  # (1, TN)
            # points[c, p, n] = origins[c, n] + z[p] * directions[c, n]
            pts_ref[c, :, :] = o_row + z * d_row  # (Ppad, TN), full-width vst

    return kernel


def _pick_tile_n(n_rays, p_pad):
    """Lane-axis tile (multiple of 128): big enough to amortise per-step
    overhead, small enough to keep double-buffered output blocks ~<= 8 MiB,
    and giving >= 4 grid steps when possible (2 per v7x TensorCore)."""
    n_pad128 = _round_up(max(n_rays, 1), 128)
    cap_vmem = (8 << 20) // (2 * 3 * p_pad * 4)
    cap_vmem = max(128, (cap_vmem // 128) * 128)
    quarter = max(128, ((n_pad128 // 4) // 128) * 128)
    return max(128, min(2048, cap_vmem, quarter))


def stratified_raysampler(
    ray_bundle,
    *,
    n_pts_per_ray,
    min_depth,
    max_depth,
    tile_n=None,
    use_pallas=None,
    component_major=False,
):
    origins = jnp.asarray(ray_bundle.origins, jnp.float32)        # (N, 3)
    directions = jnp.asarray(ray_bundle.directions, jnp.float32)  # (N, 3)
    n_rays = origins.shape[0]
    npts = int(n_pts_per_ray)

    min_depth = float(min_depth)
    max_depth = float(max_depth)
    step = (max_depth - min_depth) / (npts - 1) if npts > 1 else 0.0

    # z_vals exactly once; sample_lengths is a lazy broadcast (never produced
    # by the kernel -- it is fully redundant data).
    z_vals = jnp.linspace(
        jnp.float32(min_depth), jnp.float32(max_depth), npts, dtype=jnp.float32
    )                                                              # (P,)
    sample_lengths = jnp.broadcast_to(z_vals[None, :, None], (n_rays, npts, 1))

    out_bytes = 3 * n_rays * npts * 4
    if use_pallas is None:
        # The kernel only wins when the output is sizeable; if the consumer
        # needs (N, P, 3), the mandatory XLA transpose dominates, so require a
        # larger tensor before leaving the fused pure-JAX path.
        use_pallas = out_bytes >= ((1 << 20) if component_major else (8 << 20))

    if not use_pallas:
        pts = origins[:, None, :] + z_vals[None, :, None] * directions[:, None, :]
        if component_major:
            pts = jnp.transpose(pts, (2, 1, 0))                    # (3, P, N)
        return ray_bundle._replace(sample_points=pts, sample_lengths=sample_lengths)

    # --- Pallas path ---------------------------------------------------------
    # Rays on the 128-lane axis (pad N to 128-multiple); P only on sublanes
    # (pad to 8-multiple) -> minimal padded-lane writeback waste.
    p_pad = _round_up(max(npts, 1), 8)

    if tile_n is None:
        tile_n = _pick_tile_n(n_rays, p_pad)
    else:
        tile_n = max(128, _round_up(int(tile_n), 128))

    n_pad = _round_up(max(n_rays, tile_n), tile_n)

    # Transposed, lane-dense inputs: (3, N_pad).
    origins_t = origins.T                                           # (3, N)
    directions_t = directions.T                                     # (3, N)
    if n_pad != n_rays:
        pad = n_pad - n_rays
        origins_t = jnp.pad(origins_t, ((0, 0), (0, pad)))
        directions_t = jnp.pad(directions_t, ((0, 0), (0, pad)))

    grid = (n_pad // tile_n,)

    # Scoped-VMEM limit = computed double-buffered footprint + headroom
    # (covers v5e's 16 MiB default scoped limit; never requests all of v7x's
    # 64 MiB physical VMEM).
    out_block_bytes = 3 * p_pad * tile_n * 4
    in_block_bytes = 2 * 8 * tile_n * 4          # (3, tile_n) sublane-padded to 8
    vmem_limit_bytes = int(2 * (out_block_bytes + in_block_bytes) + (8 << 20))

    kernel = _make_sampler_kernel(min_depth, step, p_pad)

    pts_cmaj = pl.pallas_call(
        kernel,
        out_shape=jax.ShapeDtypeStruct((3, p_pad, n_pad), jnp.float32),
        grid_spec=pltpu.PrefetchScalarGridSpec(
            num_scalar_prefetch=0,
            grid=grid,
            in_specs=[
                pl.BlockSpec((3, tile_n), lambda i: (0, i)),        # origins (3, N)
                pl.BlockSpec((3, tile_n), lambda i: (0, i)),        # directions (3, N)
            ],
            out_specs=pl.BlockSpec((3, p_pad, tile_n), lambda i: (0, 0, i)),
        ),
        compiler_params=pltpu.CompilerParams(
            dimension_semantics=("parallel",),
            vmem_limit_bytes=vmem_limit_bytes,
        ),
    )(origins_t, directions_t)                                      # (3, Ppad, Npad)

    pts_cmaj = pts_cmaj[:, :npts, :n_rays]                          # (3, P, N)
    if component_major:
        sample_points = pts_cmaj                                    # kernel-native layout
    else:
        # PyTorch layout; this XLA transpose re-reads/re-writes the full tensor,
        # so downstream consumers that can take (3, P, N) should pass
        # component_major=True and skip it.
        sample_points = jnp.transpose(pts_cmaj, (2, 1, 0))          # (N, P, 3)

    return ray_bundle._replace(
        sample_points=sample_points, sample_lengths=sample_lengths
    )


if __name__ == "__main__":
    # Config (mirrors cfg.n_pts_per_ray / cfg.min_depth / cfg.max_depth)
    N_PTS_PER_RAY = 96     # multiple of 8 -> no sublane padding waste
    MIN_DEPTH = 0.5
    MAX_DEPTH = 4.0
    N_RAYS = 1000          # not a multiple of 128 -> exercises ray (lane) padding

    key = jax.random.PRNGKey(0)
    k_o, k_d = jax.random.split(key)
    origins = jax.random.normal(k_o, (N_RAYS, 3), dtype=jnp.float32)
    directions = jax.random.normal(k_d, (N_RAYS, 3), dtype=jnp.float32)

    bundle = RayBundle(
        origins=origins, directions=directions, sample_points=None, sample_lengths=None
    )

    # Default (PyTorch-parity) layout, forcing the Pallas path for the test.
    out = stratified_raysampler(
        bundle,
        n_pts_per_ray=N_PTS_PER_RAY,
        min_depth=MIN_DEPTH,
        max_depth=MAX_DEPTH,
        use_pallas=True,
    )
    jax.block_until_ready(out.sample_points)
    jax.block_until_ready(out.sample_lengths)

    # Kernel-native lane-dense layout (no wrapper transpose).
    out_cm = stratified_raysampler(
        bundle,
        n_pts_per_ray=N_PTS_PER_RAY,
        min_depth=MIN_DEPTH,
        max_depth=MAX_DEPTH,
        use_pallas=True,
        component_major=True,
    )
    jax.block_until_ready(out_cm.sample_points)

    # Pure-JAX reference check
    z_ref = jnp.linspace(MIN_DEPTH, MAX_DEPTH, N_PTS_PER_RAY, dtype=jnp.float32)
    pts_ref = origins[:, None, :] + z_ref[None, :, None] * directions[:, None, :]
    len_ref = jnp.broadcast_to(z_ref[None, :], (N_RAYS, N_PTS_PER_RAY))[..., None]

    assert out.sample_points.shape == (N_RAYS, N_PTS_PER_RAY, 3)
    assert out.sample_lengths.shape == (N_RAYS, N_PTS_PER_RAY, 1)
    assert jnp.allclose(out.sample_points, pts_ref, atol=1e-5, rtol=1e-5)
    assert jnp.allclose(out.sample_lengths, len_ref, atol=1e-5, rtol=1e-5)

    assert out_cm.sample_points.shape == (3, N_PTS_PER_RAY, N_RAYS)
    assert jnp.allclose(
        out_cm.sample_points, jnp.transpose(pts_ref, (2, 1, 0)), atol=1e-5, rtol=1e-5
    )

    print("KERNEL_OK")
</pallas_src>

<mosaic_0001>
module attributes {stable_mosaic.version = 11 : i64} {
  func.func @kernel(%arg0: i32, %arg1: memref<3x256xf32, #tpu.memory_space<vmem>>, %arg2: memref<3x256xf32, #tpu.memory_space<vmem>>, %arg3: memref<3x96x256xf32, #tpu.memory_space<vmem>>) attributes {dimension_semantics = [#tpu.dimension_semantics<parallel>], iteration_bounds = array<i64: 4>, scalar_prefetch = 0 : i64, scratch_operands = 0 : i64, tpu.core_type = #tpu.core_type<tc>, window_params = [{transform_indices = @transform_0, window_bounds = array<i64: 3, 256>}, {transform_indices = @transform_1, window_bounds = array<i64: 3, 256>}, {transform_indices = @transform_2, window_bounds = array<i64: 3, 96, 256>}]} {
    %0 = tpu.iota {dimensions = array<i32: 0>} : vector<96x1xi32>
    %1 = arith.sitofp %0 : vector<96x1xi32> to vector<96x1xf32>
    %cst = arith.constant 0.036842104 : f32
    %2 = vector.broadcast %cst : f32 to vector<96x1xf32>
    %3 = arith.mulf %2, %1 : vector<96x1xf32>
    %cst_0 = arith.constant 5.000000e-01 : f32
    %4 = vector.broadcast %cst_0 : f32 to vector<96x1xf32>
    %5 = arith.addf %4, %3 : vector<96x1xf32>
    %c0 = arith.constant 0 : index
    %c0_1 = arith.constant 0 : index
    %6 = vector.load %arg1[%c0, %c0_1] : memref<3x256xf32, #tpu.memory_space<vmem>>, vector<1x256xf32>
    %c0_2 = arith.constant 0 : index
    %c0_3 = arith.constant 0 : index
    %7 = vector.load %arg2[%c0_2, %c0_3] : memref<3x256xf32, #tpu.memory_space<vmem>>, vector<1x256xf32>
    %8 = vector.broadcast %5 : vector<96x1xf32> to vector<96x256xf32>
    %9 = vector.broadcast %7 : vector<1x256xf32> to vector<96x256xf32>
    %10 = arith.mulf %8, %9 : vector<96x256xf32>
    %11 = vector.broadcast %6 : vector<1x256xf32> to vector<96x256xf32>
    %12 = arith.addf %11, %10 : vector<96x256xf32>
    %c0_4 = arith.constant 0 : index
    %c0_5 = arith.constant 0 : index
    %c0_6 = arith.constant 0 : index
    %13 = vector.load %arg3[%c0_4, %c0_5, %c0_6] : memref<3x96x256xf32, #tpu.memory_space<vmem>>, vector<1x96x256xf32>
    %14 = vector.shape_cast %13 : vector<1x96x256xf32> to vector<96x256xf32>
    %15 = vector.shape_cast %12 : vector<96x256xf32> to vector<1x96x256xf32>
    tpu.vector_store %arg3[%c0_4, %c0_5, %c0_6], %15 {strides = array<i32>} : memref<3x96x256xf32, #tpu.memory_space<vmem>>, vector<1x96x256xf32>,
    %c1 = arith.constant 1 : index
    %c0_7 = arith.constant 0 : index
    %16 = vector.load %arg1[%c1, %c0_7] : memref<3x256xf32, #tpu.memory_space<vmem>>, vector<1x256xf32>
    %c1_8 = arith.constant 1 : index
    %c0_9 = arith.constant 0 : index
    %17 = vector.load %arg2[%c1_8, %c0_9] : memref<3x256xf32, #tpu.memory_space<vmem>>, vector<1x256xf32>
    %18 = vector.broadcast %5 : vector<96x1xf32> to vector<96x256xf32>
    %19 = vector.broadcast %17 : vector<1x256xf32> to vector<96x256xf32>
    %20 = arith.mulf %18, %19 : vector<96x256xf32>
    %21 = vector.broadcast %16 : vector<1x256xf32> to vector<96x256xf32>
    %22 = arith.addf %21, %20 : vector<96x256xf32>
    %c1_10 = arith.constant 1 : index
    %c0_11 = arith.constant 0 : index
    %c0_12 = arith.constant 0 : index
    %23 = vector.load %arg3[%c1_10, %c0_11, %c0_12] : memref<3x96x256xf32, #tpu.memory_space<vmem>>, vector<1x96x256xf32>
    %24 = vector.shape_cast %23 : vector<1x96x256xf32> to vector<96x256xf32>
    %25 = vector.shape_cast %22 : vector<96x256xf32> to vector<1x96x256xf32>
    tpu.vector_store %arg3[%c1_10, %c0_11, %c0_12], %25 {strides = array<i32>} : memref<3x96x256xf32, #tpu.memory_space<vmem>>, vector<1x96x256xf32>,
    %c2 = arith.constant 2 : index
    %c0_13 = arith.constant 0 : index
    %26 = vector.load %arg1[%c2, %c0_13] : memref<3x256xf32, #tpu.memory_space<vmem>>, vector<1x256xf32>
    %c2_14 = arith.constant 2 : index
    %c0_15 = arith.constant 0 : index
    %27 = vector.load %arg2[%c2_14, %c0_15] : memref<3x256xf32, #tpu.memory_space<vmem>>, vector<1x256xf32>
    %28 = vector.broadcast %5 : vector<96x1xf32> to vector<96x256xf32>
    %29 = vector.broadcast %27 : vector<1x256xf32> to vector<96x256xf32>
    %30 = arith.mulf %28, %29 : vector<96x256xf32>
    %31 = vector.broadcast %26 : vector<1x256xf32> to vector<96x256xf32>
    %32 = arith.addf %31, %30 : vector<96x256xf32>
    %c2_16 = arith.constant 2 : index
    %c0_17 = arith.constant 0 : index
    %c0_18 = arith.constant 0 : index
    %33 = vector.load %arg3[%c2_16, %c0_17, %c0_18] : memref<3x96x256xf32, #tpu.memory_space<vmem>>, vector<1x96x256xf32>
    %34 = vector.shape_cast %33 : vector<1x96x256xf32> to vector<96x256xf32>
    %35 = vector.shape_cast %32 : vector<96x256xf32> to vector<1x96x256xf32>
    tpu.vector_store %arg3[%c2_16, %c0_17, %c0_18], %35 {strides = array<i32>} : memref<3x96x256xf32, #tpu.memory_space<vmem>>, vector<1x96x256xf32>,
    return
  }
  func.func @transform_0(%arg0: i32) -> (i32, i32) {
    %c0_i32 = arith.constant 0 : i32
    %c0_i32_0 = arith.constant 0 : i32
    return %c0_i32, %arg0 : i32, i32
  }
  func.func @transform_1(%arg0: i32) -> (i32, i32) {
    %c0_i32 = arith.constant 0 : i32
    %c0_i32_0 = arith.constant 0 : i32
    return %c0_i32, %arg0 : i32, i32
  }
  func.func @transform_2(%arg0: i32) -> (i32, i32, i32) {
    %c0_i32 = arith.constant 0 : i32
    %c0_i32_0 = arith.constant 0 : i32
    %c0_i32_1 = arith.constant 0 : i32
    return %c0_i32, %c0_i32_0, %arg0 : i32, i32, i32
  }
}

</mosaic_0001>

<bundles_post_ra>
// kernel: tpu_custom_call.1
= control target key start
LH: loop header
LB: loop body
LE: loop exit
PB: predicated region body
PF: predicated region fallthrough
CT: control target
= control target key end

     0   :  { %7 = vsyncpa [#allocation3], 0  ;;  %s1529_s0 = inlined_call_operand.hbm [shape: f32[3,1024], index: 0, kind: input, shape index: {}]   ;;  %s1530_s1 = inlined_call_operand.hbm [shape: f32[3,1024], index: 1, kind: input, shape index: {}]   ;;  %s1531_s2 = inlined_call_operand.hbm [shape: f32[3,96,1024], index: 2, kind: output, shape index: {}]  }
   0x1   :  { %9 = vsyncpa [#allocation3 + $0x1], 0 }
   0x2   :  { %10 = vsyncpa [#allocation6], 0 }
   0x3   :  { %12 = vsyncpa [#allocation6 + $0x1], 0 }
   0x4   :  { %13 = vsyncpa [#allocation4], 0 }
   0x5   :  { %15 = vsyncpa [#allocation4 + $0x1], 0  ;;  %s933_s9 = smov 0   ;;  %s935_s10 = smov 0  }
   0x6   :  { %s937_s11 = smov 0   ;;  %s939_s12 = smov 0  }
   0x7 LB: > { %s954_s13 = sadd.s32 4294967295, %s910_s12   ;;  %s654_s14 = sadd.s32 4294967294, %s910_s12   ;;  %s910_s12 = sphi %s939_s12, %s1549_s12   ;;  %s906_s11 = sphi %s937_s11, %s1548_s11   ;;  %s902_s10 = sphi %s935_s10, %s1547_s10   ;;  %s898_s9 = sphi %s933_s9, %s1546_s9  }
   0x8   : > { %s958_s15 = sadd.s32 1, %s910_s12   ;;  %s28_s16 = sadd.s32 1, %s906_s11 }
   0x9   : > { %s25_s17 = ssub.s32 %s910_s12, %s958_s15  ;;  %p35_p0 = scmp.ne.s32.totalorder %s906_s11, %s902_s10 }
   0xa   : > { %p26_p1 = scmp.eq.s32.totalorder %s25_s17, 0  ;;  %p36_p2 = scmp.eq.s32.totalorder %s910_s12, 0 }
   0xb   : > { %p41_p3 = scmp.ne.s32.totalorder %s902_s10, %s898_s9  ;;  %p42_p4 = scmp.eq.s32.totalorder %s954_s13, 0 }
   0xc   : > { %s970_s18 = scalar_select %p26_p1, %s906_s11, %s28_s16  }
   0xd   : > { %p972_p5 = por %p36_p2, %p35_p0  ;;  %p976_p6 = por %p42_p4, %p41_p3 }
   0xe   : > { %p91_p7 = scmp.eq.s32.totalorder %s954_s13, 3  ;;  %p97_p8 = scmp.eq.s32.totalorder %s654_s14, 3 }
   0xf   : > { %s1535_s20 = scalar_select %p976_p6, 1, 0 }
  0x10   : > { %p743_p9 = scmp.lt.s32.totalorder %s910_s12, 4  ;;  %p982_p10 = por %p91_p7, %p35_p0 }
  0x11   : > { %p986_p11 = por %p97_p8, %p41_p3  ;;  %s991_s23 = sand.u32 1, %s906_s11  }
  0x12   : > { %s1536_s21 = scalar_select %p982_p10, 1, 0 }
  0x13   : > { %s1537_s22 = scalar_select %p986_p11, 1, 0 }
  0x14   : > { %s722_s24 = sshll.u32 %s910_s12, 7  ;;  %s657_s25 = sshll.u32 %s991_s23, 3 }
  0x15   : > { %s1000_s28 = scalar_lea.hbm %s1529_s0, %s722_s24  ;;  %s121_s29 = scalar_lea.vmem [#allocation2], %s657_s25 }
  0x16   : > { %s129_s30 = sshll.u32 %s121_s29, 4  ;;  %p1006_p12 = pnand %p743_p9, %p972_p5  ;;  %s1010_s30 = int_to_ptr.vmem [resolvable:$true] %s129_s30 }
  0x17   : > { %s118_s4 = scalar_lea.sflag [#allocation3], %s991_s23  ;;  %s780_s5 = scalar_lea.hbm %s1000_s28, 128 }
  0x18   : > { %p781_p1 = scmp.ne.s32.totalorder %s1000_s28, %s780_s5  ;;  %p782_p2 = pneg %p1006_p12 }
  0x19   : > { %s785_s8 = scalar_lea.hbm %s1529_s0, 512  ;;  %p786_p5 = scmp.lt.u32.totalorder %s1000_s28, %s1529_s0 }
  0x1a   : > { %p783_p3 = pnand %p782_p2, %p781_p1  ;;  %p787_p7 = scmp.lt.u32.totalorder %s785_s8, %s780_s5 }
  0x1b   : > { %p789_p9 = scmp.lt.u32.totalorder %s780_s5, %s1000_s28 }
  0x1c   : > { %p784_p4 = pneg %p783_p3  ;;  %p788_p8 = por %p787_p7, %p786_p5 }
  0x1e   : > { %p790_p13 = por %p789_p9, %p788_p8 }
  0x20   : > { %p791_p0 = pnand %p790_p13, %p784_p4 }
  0x22   : > { %794 = shalt.err (!%p791_p0)
}
  0x23   : > { %s795_s17 = scalar_lea.vmem %s1010_s30, 128  ;;  %s912_s19 = smov [#allocation2]  }
  0x24   : > { %p796_p1 = scmp.ne.s32.totalorder %s1010_s30, %s795_s17  ;;  %s800_s26 = sshll.u32 %s912_s19, 4  ;;  %s801_s26 = int_to_ptr.vmem [resolvable:$false] %s800_s26 }
  0x25   : > { %s802_s27 = scalar_lea.vmem %s801_s26, 256  ;;  %p803_p10 = scmp.lt.s32.totalorder %s1010_s30, %s801_s26 }
  0x26   : > { %p798_p3 = pnand %p796_p1, %p782_p2  ;;  %p804_p5 = scmp.lt.s32.totalorder %s802_s27, %s795_s17 }
  0x28   : > { %p799_p11 = pneg %p798_p3  ;;  %p805_p7 = por %p804_p5, %p803_p10 }
  0x2a   : > { %p806_p8 = pnand %p805_p7, %p799_p11 }
  0x2c   : > { %809 = shalt.err (!%p806_p8)
}
  0x2d   : > { %735 = dma.hbm_to_vmem [thread:$0]  (!%p1006_p12), %s1000_s28, 128, %s1010_s30, %s118_s4  }
  0x2e   : > { %p1539_p13 = scmp.lt.s32.totalorder %s910_s12, 5  ;;  %p1540_p0 = scmp.ge.s32.totalorder %s910_s12, 1 }
  0x2f   : > { %s1053_s7 = scalar_lea.hbm %s1530_s1, %s722_s24  ;;  %s140_s8 = scalar_lea.vmem [#allocation5], %s657_s25 }
  0x30   : > { %p1044_p4 = pnand %p1540_p0, %p1539_p13  ;;  %s148_s14 = sshll.u32 %s140_s8, 4  ;;  %s149_s14 = int_to_ptr.vmem [resolvable:$true] %s148_s14 }
  0x31   : > { %s137_s28 = scalar_lea.sflag [#allocation6], %s991_s23  ;;  %s810_s30 = scalar_lea.hbm %s1053_s7, 128 }
  0x32   : > { %s1541_s29 = scalar_select %p1044_p4, 1, 0 }
  0x33   : > { %p811_p10 = scmp.ne.s32.totalorder %s1053_s7, %s810_s30  ;;  %s815_s24 = scalar_lea.hbm %s1530_s1, 512 }
  0x34   : > { %p816_p1 = scmp.lt.u32.totalorder %s1053_s7, %s1530_s1  ;;  %p817_p3 = scmp.lt.u32.totalorder %s815_s24, %s810_s30 }
  0x35   : > { %p813_p11 = pnand %p811_p10, %p782_p2  ;;  %p819_p7 = scmp.lt.u32.totalorder %s810_s30, %s1053_s7 }
  0x36   : > { %p818_p5 = por %p817_p3, %p816_p1 }
  0x37   : > { %p814_p9 = pneg %p813_p11 }
  0x38   : > { %p820_p8 = por %p819_p7, %p818_p5 }
  0x3a   : > { %p821_p13 = pnand %p820_p8, %p814_p9 }
  0x3c   : > { %824 = shalt.err (!%p821_p13)
}
  0x3d   : > { %s825_s23 = scalar_lea.vmem %s149_s14, 128  ;;  %s913_s25 = smov [#allocation5]  }
  0x3e   : > { %p826_p0 = scmp.ne.s32.totalorder %s149_s14, %s825_s23  ;;  %s830_s26 = sshll.u32 %s913_s25, 4  ;;  %s831_s26 = int_to_ptr.vmem [resolvable:$false] %s830_s26 }
  0x3f   : > { %s832_s27 = scalar_lea.vmem %s831_s26, 256  ;;  %p833_p6 = scmp.lt.s32.totalorder %s149_s14, %s831_s26 }
  0x40   : > { %p828_p10 = pnand %p826_p0, %p782_p2  ;;  %p834_p4 = scmp.lt.s32.totalorder %s832_s27, %s825_s23 }
  0x42   : > { %p829_p11 = pneg %p828_p10  ;;  %p835_p1 = por %p834_p4, %p833_p6 }
  0x44   : > { %p836_p3 = pnand %p835_p1, %p829_p11 }
  0x46   : > { %839 = shalt.err (!%p836_p3)
}
  0x47   : > { %738 = dma.hbm_to_vmem [thread:$0]  (!%p1006_p12), %s1053_s7, 128, %s149_s14, %s137_s28  }
  0x48   : > { %p1542_p9 = scmp.ne.s32.totalorder %s1541_s29, 0 }
  0x49   : > { %s1080_s5 = sand.u32 (!%p1542_p9), 1, %s902_s10   ;;  %p1543_p6 = scmp.ne.s32.totalorder (!%p1542_p9), %s1535_s20, 0 }
  0x4a   : > { %157 = sbr.rel (%p1542_p9) target bundleno = 163 (0xa3), region = 28  ;;  %s664_s6 = sshll.u32 (!%p1542_p9), %s1080_s5, 3 }
  0x4b   : > { %s160_s8 = scalar_lea.sflag (!%p1542_p9), [#allocation3], %s1080_s5  ;;  %s1084_s30 = scalar_lea.vmem (!%p1542_p9), [#allocation2], %s664_s6 }
  0x51   : > { %885 = dma.done.wait (%p1543_p6), %s160_s8, 128  }
  0x52   : > { %887 = vsyncadd (%p1543_p6), %s160_s8, 4294967168  ;;  %s169_s3 = scalar_lea.sflag [#allocation6], %s1080_s5  ;;  %s1091_s29 = scalar_lea.vmem [#allocation5], %s664_s6 }
  0x53   : > { %889 = dma.done.wait (%p1543_p6), %s169_s3, 128  }
  0x54   : > { %891 = vsyncadd (%p1543_p6), %s169_s3, 4294967168  ;;  %v201_v0 = vlaneseq  ;;  %s725_s20 = smul.u32 576, %s1080_s5  ;;  %v250_v14 = vld [vmem:[%s1084_s30] ss:$4 sm:$0x3]  ;;  %s724_s14 = sshll.u32 %s954_s13, 8 }
  0x55   : > { %v251_v15 = vld [vmem:[%s1091_s29] ss:$4 sm:$0x3]  ;;  %v667_v60 = vld [vmem:[%s1091_s29 + $0x1] ss:$4 sm:$0x3]  ;;  %s1475_s16 = scalar_lea.hbm %s1531_s2, %s724_s14 }
  0x56   : > { %v1097_v1 = vshrl.u32 %v201_v0, 7  ;;  %s1158_s7 = scalar_lea.vmem [#allocation7], %s725_s20  ;;  %s545_s24 = scalar_lea.sflag [#allocation4], %s1080_s5 }
  0x57   : > { %s558_s13 = sshll.u32 %s1158_s7, 4  ;;  %p1544_p2 = scmp.ne.s32.totalorder %s1536_s21, 0  ;;  %s1481_s13 = int_to_ptr.vmem [resolvable:$true] %s558_s13 }
  0x58   : > { %v214_v2 = vcvt.s32.f32 %v1097_v1  ;;  %v1101_v3 = vsub.s32 0, %v1097_v1  ;;  %v1104_v4 = vsub.s32 1, %v1097_v1  ;;  %v203_v5 = vadd.s32 8, %v1097_v1  ;;  %s840_s17 = scalar_lea.vmem %s1481_s13, 9216  ;;  %s914_s19 = smov [#allocation7]  }
  0x59   : > { %v204_v6 = vadd.s32 16, %v1097_v1  ;;  %v205_v7 = vadd.s32 24, %v1097_v1  ;;  %v206_v8 = vadd.s32 32, %v1097_v1  ;;  %v207_v9 = vadd.s32 40, %v1097_v1  ;;  %p841_p12 = scmp.ne.s32.totalorder %s1481_s13, %s840_s17  ;;  %s844_s23 = sshll.u32 %s914_s19, 4  ;;  %s845_s23 = int_to_ptr.vmem [resolvable:$false] %s844_s23 }
  0x5a   : > { %v226_v10 = vmul.f32 0.036842104, %v214_v2  ;;  %v215_v11 = vcvt.s32.f32 %v203_v5  ;;  %v208_v12 = vadd.s32 48, %v1097_v1  ;;  %v1114_v13 = vadd.s32 56, %v1097_v1  ;;  %s846_s25 = scalar_lea.vmem %s845_s23, 18432  ;;  %p847_p7 = scmp.lt.s32.totalorder %s1481_s13, %s845_s23 }
  0x5b   : > { %v216_v16 = vcvt.s32.f32 %v204_v6  ;;  %v217_v17 = vcvt.s32.f32 %v205_v7  ;;  %v218_v18 = vcvt.s32.f32 %v206_v8  ;;  %v219_v19 = vcvt.s32.f32 %v207_v9  ;;  %v666_v8 = vld [vmem:[%s1084_s30 + $0x1] ss:$4 sm:$0x3]  ;;  %p842_p4 = pnand %p841_p12, %p1544_p2  ;;  %p848_p8 = scmp.lt.s32.totalorder %s846_s25, %s840_s17 }
  0x5c   : > { %v1118_v20 = vadd.f32 0.5, %v226_v10  ;;  %v1121_v21 = vrot.slane %v251_v15, %v1101_v3  ;;  %v1124_v22 = vrot.slane %v250_v14, %v1101_v3  ;;  %v1127_v23 = vrot.slane %v251_v15, %v1104_v4 }
  0x5d   : > { %v1130_v24 = vrot.slane %v250_v14, %v1104_v4  ;;  %v227_v25 = vmul.f32 0.036842104, %v215_v11  ;;  %v228_v26 = vmul.f32 0.036842104, %v216_v16  ;;  %v229_v27 = vmul.f32 0.036842104, %v217_v17  ;;  %p843_p5 = pneg %p842_p4  ;;  %p849_p13 = por %p848_p8, %p847_p7 }
  0x5e   : > { %v263_v28 = vmul.f32 %v1121_v21, %v1118_v20  ;;  %v264_v29 = vmul.f32 %v1127_v23, %v1118_v20  ;;  %v230_v30 = vmul.f32 0.036842104, %v218_v18  ;;  %v231_v31 = vmul.f32 0.036842104, %v219_v19 }
  0x5f   : > { %v1136_v32 = vadd.f32 0.5, %v227_v25  ;;  %v1138_v33 = vadd.f32 0.5, %v228_v26  ;;  %v1140_v34 = vadd.f32 0.5, %v229_v27  ;;  %v220_v35 = vcvt.s32.f32 %v208_v12  ;;  %p850_p0 = pnand %p849_p13, %p843_p5 }
  0x60   : > { %v298_v36 = vadd.f32 %v1124_v22, %v263_v28  ;;  %v299_v37 = vadd.f32 %v1130_v24, %v264_v29  ;;  %v1144_v38 = vadd.f32 0.5, %v230_v30  ;;  %v1146_v39 = vadd.f32 0.5, %v231_v31 }
  0x61   : > { %v265_v40 = vmul.f32 %v1121_v21, %v1136_v32  ;;  %v266_v41 = vmul.f32 %v1127_v23, %v1136_v32  ;;  %v267_v42 = vmul.f32 %v1121_v21, %v1138_v33  ;;  %v268_v43 = vmul.f32 %v1127_v23, %v1138_v33 }
  0x62   : > { %322 = vst [vmem:[%s1158_s7] sm:$0xff] %v298_v36  ;;  %323 = vst [vmem:[%s1158_s7 + $0x8] sm:$0xff] %v299_v37  ;;  %v269_v44 = vmul.f32 %v1121_v21, %v1140_v34  ;;  %v270_v45 = vmul.f32 %v1127_v23, %v1140_v34  ;;  %v271_v46 = vmul.f32 %v1121_v21, %v1144_v38  ;;  %v232_v58 = vmul.f32 0.036842104, %v220_v35 }
  0x63   : > { %v272_v47 = vmul.f32 %v1127_v23, %v1144_v38  ;;  %v300_v48 = vadd.f32 %v1124_v22, %v265_v40  ;;  %v301_v49 = vadd.f32 %v1130_v24, %v266_v41  ;;  %v302_v50 = vadd.f32 %v1124_v22, %v267_v42 }
  0x64   : > { %v303_v51 = vadd.f32 %v1130_v24, %v268_v43  ;;  %v304_v52 = vadd.f32 %v1124_v22, %v269_v44  ;;  %v305_v53 = vadd.f32 %v1130_v24, %v270_v45  ;;  %v306_v54 = vadd.f32 %v1124_v22, %v271_v46 }
  0x65   : > { %v307_v55 = vadd.f32 %v1130_v24, %v272_v47  ;;  %324 = vst [vmem:[%s1158_s7 + $0x10] sm:$0xff] %v300_v48  ;;  %325 = vst [vmem:[%s1158_s7 + $0x18] sm:$0xff] %v301_v49  ;;  %v273_v56 = vmul.f32 %v1121_v21, %v1146_v39  ;;  %v274_v57 = vmul.f32 %v1127_v23, %v1146_v39  ;;  %v221_v59 = vcvt.s32.f32 %v1114_v13 }
  0x66   : > { %326 = vst [vmem:[%s1158_s7 + $0x20] sm:$0xff] %v302_v50  ;;  %327 = vst [vmem:[%s1158_s7 + $0x28] sm:$0xff] %v303_v51  ;;  %v210_v61 = vadd.s32 64, %v1097_v1  ;;  %v211_v62 = vadd.s32 72, %v1097_v1  ;;  %v212_v63 = vadd.s32 80, %v1097_v1  ;;  %v213_v0 = vadd.s32 88, %v1097_v1 }
  0x67   : > { %328 = vst [vmem:[%s1158_s7 + $0x30] sm:$0xff] %v304_v52  ;;  %329 = vst [vmem:[%s1158_s7 + $0x38] sm:$0xff] %v305_v53  ;;  %v308_v2 = vadd.f32 %v1124_v22, %v273_v56  ;;  %v309_v5 = vadd.f32 %v1130_v24, %v274_v57  ;;  %v1198_v6 = vadd.f32 0.5, %v232_v58  ;;  %v233_v7 = vmul.f32 0.036842104, %v221_v59 }
  0x68   : > { %330 = vst [vmem:[%s1158_s7 + $0x40] sm:$0xff] %v306_v54  ;;  %331 = vst [vmem:[%s1158_s7 + $0x48] sm:$0xff] %v307_v55  ;;  %v222_v9 = vcvt.s32.f32 %v210_v61  ;;  %v223_v10 = vcvt.s32.f32 %v211_v62  ;;  %v224_v11 = vcvt.s32.f32 %v212_v63  ;;  %v225_v12 = vcvt.s32.f32 %v213_v0 }
  0x69   : > { %332 = vst [vmem:[%s1158_s7 + $0x50] sm:$0xff] %v308_v2  ;;  %333 = vst [vmem:[%s1158_s7 + $0x58] sm:$0xff] %v309_v5  ;;  %v275_v13 = vmul.f32 %v1121_v21, %v1198_v6  ;;  %v276_v1 = vmul.f32 %v1127_v23, %v1198_v6  ;;  %v1207_v14 = vadd.f32 0.5, %v233_v7  ;;  %v1210_v15 = vrot.slane %v667_v60, %v1101_v3 }
  0x6a   : > { %v234_v16 = vmul.f32 0.036842104, %v222_v9  ;;  %v235_v17 = vmul.f32 0.036842104, %v223_v10  ;;  %v236_v18 = vmul.f32 0.036842104, %v224_v11  ;;  %v1213_v19 = vrot.slane %v666_v8, %v1101_v3 }
  0x6b   : > { %v310_v25 = vadd.f32 %v1124_v22, %v275_v13  ;;  %v311_v26 = vadd.f32 %v1130_v24, %v276_v1  ;;  %v277_v27 = vmul.f32 %v1121_v21, %v1207_v14  ;;  %v278_v28 = vmul.f32 %v1127_v23, %v1207_v14 }
  0x6c   : > { %v1221_v29 = vadd.f32 0.5, %v234_v16  ;;  %v1223_v30 = vadd.f32 0.5, %v235_v17  ;;  %v1225_v31 = vadd.f32 0.5, %v236_v18  ;;  %v237_v35 = vmul.f32 0.036842104, %v225_v12 }
  0x6d   : > { %334 = vst [vmem:[%s1158_s7 + $0x60] sm:$0xff] %v310_v25  ;;  %335 = vst [vmem:[%s1158_s7 + $0x68] sm:$0xff] %v311_v26  ;;  %v312_v36 = vadd.f32 %v1124_v22, %v277_v27  ;;  %v313_v37 = vadd.f32 %v1130_v24, %v278_v28  ;;  %v361_v40 = vmul.f32 %v1210_v15, %v1118_v20 }
  0x6e   : > { %v1234_v41 = vrot.slane %v667_v60, %v1104_v4  ;;  %v279_v42 = vmul.f32 %v1121_v21, %v1221_v29  ;;  %v280_v43 = vmul.f32 %v1127_v23, %v1221_v29  ;;  %v281_v44 = vmul.f32 %v1121_v21, %v1223_v30 }
  0x6f   : > { %v282_v45 = vmul.f32 %v1127_v23, %v1223_v30  ;;  %336 = vst [vmem:[%s1158_s7 + $0x70] sm:$0xff] %v312_v36  ;;  %337 = vst [vmem:[%s1158_s7 + $0x78] sm:$0xff] %v313_v37  ;;  %v283_v46 = vmul.f32 %v1121_v21, %v1225_v31  ;;  %v284_v47 = vmul.f32 %v1127_v23, %v1225_v31  ;;  %v1250_v48 = vadd.f32 0.5, %v237_v35 }
  0x70   : > { %v396_v49 = vadd.f32 %v1213_v19, %v361_v40  ;;  %v314_v50 = vadd.f32 %v1124_v22, %v279_v42  ;;  %v315_v51 = vadd.f32 %v1130_v24, %v280_v43  ;;  %v316_v52 = vadd.f32 %v1124_v22, %v281_v44 }
  0x71   : > { %v317_v53 = vadd.f32 %v1130_v24, %v282_v45  ;;  %v318_v54 = vadd.f32 %v1124_v22, %v283_v46  ;;  %v319_v55 = vadd.f32 %v1130_v24, %v284_v47  ;;  %v285_v56 = vmul.f32 %v1121_v21, %v1250_v48  ;;  %v693_v46 = vld [vmem:[%s1091_s29 + $0x2] ss:$4 sm:$0x3] }
  0x72   : > { %v286_v57 = vmul.f32 %v1127_v23, %v1250_v48  ;;  %668 = vst [vmem:[%s1158_s7 + $0xc0] sm:$0xff] %v396_v49  ;;  %338 = vst [vmem:[%s1158_s7 + $0x80] sm:$0xff] %v314_v50  ;;  %v362_v58 = vmul.f32 %v1234_v41, %v1118_v20  ;;  %v1271_v59 = vrot.slane %v666_v8, %v1104_v4 }
  0x73   : > { %339 = vst [vmem:[%s1158_s7 + $0x88] sm:$0xff] %v315_v51  ;;  %340 = vst [vmem:[%s1158_s7 + $0x90] sm:$0xff] %v316_v52  ;;  %v363_v60 = vmul.f32 %v1210_v15, %v1136_v32  ;;  %v364_v21 = vmul.f32 %v1234_v41, %v1136_v32  ;;  %v320_v23 = vadd.f32 %v1124_v22, %v285_v56  ;;  %v692_v52 = vld [vmem:[%s1084_s30 + $0x2] ss:$4 sm:$0x3] }
  0x74   : > { %341 = vst [vmem:[%s1158_s7 + $0x98] sm:$0xff] %v317_v53  ;;  %342 = vst [vmem:[%s1158_s7 + $0xa0] sm:$0xff] %v318_v54  ;;  %v321_v61 = vadd.f32 %v1130_v24, %v286_v57  ;;  %v365_v62 = vmul.f32 %v1210_v15, %v1138_v33  ;;  %v366_v63 = vmul.f32 %v1234_v41, %v1138_v33 }
  0x75   : > { %343 = vst [vmem:[%s1158_s7 + $0xa8] sm:$0xff] %v319_v55  ;;  %v397_v0 = vadd.f32 %v1271_v59, %v362_v58  ;;  %v398_v2 = vadd.f32 %v1213_v19, %v363_v60  ;;  %v399_v5 = vadd.f32 %v1271_v59, %v364_v21  ;;  %v367_v22 = vmul.f32 %v1210_v15, %v1140_v34 }
  0x76   : > { %344 = vst [vmem:[%s1158_s7 + $0xb0] sm:$0xff] %v320_v23  ;;  %345 = vst [vmem:[%s1158_s7 + $0xb8] sm:$0xff] %v321_v61  ;;  %v400_v24 = vadd.f32 %v1213_v19, %v365_v62  ;;  %v401_v7 = vadd.f32 %v1271_v59, %v366_v63  ;;  %v368_v8 = vmul.f32 %v1234_v41, %v1140_v34 }
  0x77   : > { %v369_v9 = vmul.f32 %v1210_v15, %v1144_v38  ;;  %669 = vst [vmem:[%s1158_s7 + $0xc8] sm:$0xff] %v397_v0  ;;  %670 = vst [vmem:[%s1158_s7 + $0xd0] sm:$0xff] %v398_v2  ;;  %v402_v10 = vadd.f32 %v1213_v19, %v367_v22  ;;  %v370_v11 = vmul.f32 %v1234_v41, %v1144_v38 }
  0x78   : > { %671 = vst [vmem:[%s1158_s7 + $0xd8] sm:$0xff] %v399_v5  ;;  %v371_v12 = vmul.f32 %v1210_v15, %v1146_v39  ;;  %v372_v13 = vmul.f32 %v1234_v41, %v1146_v39  ;;  %672 = vst [vmem:[%s1158_s7 + $0xe0] sm:$0xff] %v400_v24  ;;  %v403_v1 = vadd.f32 %v1271_v59, %v368_v8 }
  0x79   : > { %673 = vst [vmem:[%s1158_s7 + $0xe8] sm:$0xff] %v401_v7  ;;  %v404_v16 = vadd.f32 %v1213_v19, %v369_v9  ;;  %v373_v17 = vmul.f32 %v1210_v15, %v1198_v6  ;;  %v374_v18 = vmul.f32 %v1234_v41, %v1198_v6  ;;  %674 = vst [vmem:[%s1158_s7 + $0xf0] sm:$0xff] %v402_v10 }
  0x7a   : > { %v405_v25 = vadd.f32 %v1271_v59, %v370_v11  ;;  %v406_v26 = vadd.f32 %v1213_v19, %v371_v12  ;;  %v407_v27 = vadd.f32 %v1271_v59, %v372_v13  ;;  %v375_v28 = vmul.f32 %v1210_v15, %v1207_v14  ;;  %675 = vst [vmem:[%s1158_s7 + $0xf8] sm:$0xff] %v403_v1 }
  0x7b   : > { %676 = vst [vmem:[%s1158_s7 + $0x100] sm:$0xff] %v404_v16  ;;  %v408_v35 = vadd.f32 %v1213_v19, %v373_v17  ;;  %v409_v36 = vadd.f32 %v1271_v59, %v374_v18  ;;  %v376_v37 = vmul.f32 %v1234_v41, %v1207_v14  ;;  %v377_v40 = vmul.f32 %v1210_v15, %v1221_v29 }
  0x7c   : > { %677 = vst [vmem:[%s1158_s7 + $0x108] sm:$0xff] %v405_v25  ;;  %678 = vst [vmem:[%s1158_s7 + $0x110] sm:$0xff] %v406_v26  ;;  %v410_v42 = vadd.f32 %v1213_v19, %v375_v28  ;;  %v378_v43 = vmul.f32 %v1234_v41, %v1221_v29  ;;  %v379_v44 = vmul.f32 %v1210_v15, %v1223_v30 }
  0x7d   : > { %679 = vst [vmem:[%s1158_s7 + $0x118] sm:$0xff] %v407_v27  ;;  %v380_v45 = vmul.f32 %v1234_v41, %v1223_v30  ;;  %680 = vst [vmem:[%s1158_s7 + $0x120] sm:$0xff] %v408_v35  ;;  %v411_v47 = vadd.f32 %v1271_v59, %v376_v37  ;;  %v412_v49 = vadd.f32 %v1213_v19, %v377_v40 }
  0x7e   : > { %681 = vst [vmem:[%s1158_s7 + $0x128] sm:$0xff] %v409_v36  ;;  %v381_v50 = vmul.f32 %v1210_v15, %v1225_v31  ;;  %v382_v51 = vmul.f32 %v1234_v41, %v1225_v31  ;;  %682 = vst [vmem:[%s1158_s7 + $0x130] sm:$0xff] %v410_v42  ;;  %v413_v53 = vadd.f32 %v1271_v59, %v378_v43 }
  0x7f   : > { %v414_v54 = vadd.f32 %v1213_v19, %v379_v44  ;;  %v415_v55 = vadd.f32 %v1271_v59, %v380_v45  ;;  %v383_v56 = vmul.f32 %v1210_v15, %v1250_v48  ;;  %683 = vst [vmem:[%s1158_s7 + $0x138] sm:$0xff] %v411_v47  ;;  %684 = vst [vmem:[%s1158_s7 + $0x140] sm:$0xff] %v412_v49 }
  0x80   : > { %v416_v57 = vadd.f32 %v1213_v19, %v381_v50  ;;  %v417_v58 = vadd.f32 %v1271_v59, %v382_v51  ;;  %v384_v60 = vmul.f32 %v1234_v41, %v1250_v48  ;;  %v1363_v21 = vrot.slane %v693_v46, %v1101_v3  ;;  %685 = vst [vmem:[%s1158_s7 + $0x148] sm:$0xff] %v413_v53 }
  0x81   : > { %686 = vst [vmem:[%s1158_s7 + $0x150] sm:$0xff] %v414_v54  ;;  %687 = vst [vmem:[%s1158_s7 + $0x158] sm:$0xff] %v415_v55  ;;  %v418_v23 = vadd.f32 %v1213_v19, %v383_v56  ;;  %v1370_v15 = vrot.slane %v692_v52, %v1101_v3  ;;  %v1373_v61 = vrot.slane %v693_v46, %v1104_v4 }
  0x82   : > { %v1376_v62 = vrot.slane %v692_v52, %v1104_v4  ;;  %688 = vst [vmem:[%s1158_s7 + $0x160] sm:$0xff] %v416_v57  ;;  %689 = vst [vmem:[%s1158_s7 + $0x168] sm:$0xff] %v417_v58  ;;  %v419_v41 = vadd.f32 %v1271_v59, %v384_v60  ;;  %v460_v63 = vmul.f32 %v1363_v21, %v1118_v20 }
  0x83   : > { %v462_v0 = vmul.f32 %v1363_v21, %v1136_v32  ;;  %v464_v3 = vmul.f32 %v1363_v21, %v1138_v33  ;;  %690 = vst [vmem:[%s1158_s7 + $0x170] sm:$0xff] %v418_v23  ;;  %v461_v4 = vmul.f32 %v1373_v61, %v1118_v20  ;;  %v463_v19 = vmul.f32 %v1373_v61, %v1136_v32 }
  0x84   : > { %v465_v59 = vmul.f32 %v1373_v61, %v1138_v33  ;;  %v466_v2 = vmul.f32 %v1363_v21, %v1140_v34  ;;  %691 = vst [vmem:[%s1158_s7 + $0x178] sm:$0xff] %v419_v41  ;;  %v495_v5 = vadd.f32 %v1370_v15, %v460_v63  ;;  %v467_v20 = vmul.f32 %v1373_v61, %v1140_v34 }
  0x85   : > { %v497_v22 = vadd.f32 %v1370_v15, %v462_v0  ;;  %v499_v24 = vadd.f32 %v1370_v15, %v464_v3  ;;  %v496_v32 = vadd.f32 %v1376_v62, %v461_v4  ;;  %v498_v33 = vadd.f32 %v1376_v62, %v463_v19 }
  0x86   : > { %v500_v7 = vadd.f32 %v1376_v62, %v465_v59  ;;  %v501_v8 = vadd.f32 %v1370_v15, %v466_v2  ;;  %694 = vst [vmem:[%s1158_s7 + $0x180] sm:$0xff] %v495_v5  ;;  %v502_v9 = vadd.f32 %v1376_v62, %v467_v20  ;;  %v468_v10 = vmul.f32 %v1363_v21, %v1144_v38 }
  0x87   : > { %696 = vst [vmem:[%s1158_s7 + $0x190] sm:$0xff] %v497_v22  ;;  %698 = vst [vmem:[%s1158_s7 + $0x1a0] sm:$0xff] %v499_v24  ;;  %v469_v34 = vmul.f32 %v1373_v61, %v1144_v38  ;;  %v470_v11 = vmul.f32 %v1363_v21, %v1146_v39  ;;  %v471_v12 = vmul.f32 %v1373_v61, %v1146_v39 }
  0x88   : > { %695 = vst [vmem:[%s1158_s7 + $0x188] sm:$0xff] %v496_v32  ;;  %697 = vst [vmem:[%s1158_s7 + $0x198] sm:$0xff] %v498_v33  ;;  %v472_v13 = vmul.f32 %v1363_v21, %v1198_v6  ;;  %v473_v1 = vmul.f32 %v1373_v61, %v1198_v6  ;;  %v474_v38 = vmul.f32 %v1363_v21, %v1207_v14 }
  0x89   : > { %699 = vst [vmem:[%s1158_s7 + $0x1a8] sm:$0xff] %v500_v7  ;;  %700 = vst [vmem:[%s1158_s7 + $0x1b0] sm:$0xff] %v501_v8  ;;  %v503_v16 = vadd.f32 %v1370_v15, %v468_v10  ;;  %v504_v17 = vadd.f32 %v1376_v62, %v469_v34  ;;  %v505_v18 = vadd.f32 %v1370_v15, %v470_v11 }
  0x8a   : > { %701 = vst [vmem:[%s1158_s7 + $0x1b8] sm:$0xff] %v502_v9  ;;  %v475_v39 = vmul.f32 %v1373_v61, %v1207_v14  ;;  %v506_v6 = vadd.f32 %v1376_v62, %v471_v12  ;;  %v507_v25 = vadd.f32 %v1370_v15, %v472_v13  ;;  %v508_v26 = vadd.f32 %v1376_v62, %v473_v1 }
  0x8b   : > { %v509_v27 = vadd.f32 %v1370_v15, %v474_v38  ;;  %702 = vst [vmem:[%s1158_s7 + $0x1c0] sm:$0xff] %v503_v16  ;;  %703 = vst [vmem:[%s1158_s7 + $0x1c8] sm:$0xff] %v504_v17  ;;  %v476_v35 = vmul.f32 %v1363_v21, %v1221_v29  ;;  %v477_v14 = vmul.f32 %v1373_v61, %v1221_v29 }
  0x8c   : > { %704 = vst [vmem:[%s1158_s7 + $0x1d0] sm:$0xff] %v505_v18  ;;  %v510_v28 = vadd.f32 %v1376_v62, %v475_v39  ;;  %v478_v36 = vmul.f32 %v1363_v21, %v1223_v30  ;;  %705 = vst [vmem:[%s1158_s7 + $0x1d8] sm:$0xff] %v506_v6  ;;  %v479_v37 = vmul.f32 %v1373_v61, %v1223_v30 }
  0x8d   : > { %706 = vst [vmem:[%s1158_s7 + $0x1e0] sm:$0xff] %v507_v25  ;;  %707 = vst [vmem:[%s1158_s7 + $0x1e8] sm:$0xff] %v508_v26  ;;  %v480_v40 = vmul.f32 %v1363_v21, %v1225_v31  ;;  %v481_v29 = vmul.f32 %v1373_v61, %v1225_v31  ;;  %v482_v42 = vmul.f32 %v1363_v21, %v1250_v48 }
  0x8e   : > { %708 = vst [vmem:[%s1158_s7 + $0x1f0] sm:$0xff] %v509_v27  ;;  %709 = vst [vmem:[%s1158_s7 + $0x1f8] sm:$0xff] %v510_v28  ;;  %v511_v43 = vadd.f32 %v1370_v15, %v476_v35  ;;  %v512_v30 = vadd.f32 %v1376_v62, %v477_v14  ;;  %v513_v44 = vadd.f32 %v1370_v15, %v478_v36 }
  0x8f   : > { %v483_v45 = vmul.f32 %v1373_v61, %v1250_v48  ;;  %v514_v31 = vadd.f32 %v1376_v62, %v479_v37  ;;  %v515_v46 = vadd.f32 %v1370_v15, %v480_v40  ;;  %v516_v47 = vadd.f32 %v1376_v62, %v481_v29 }
  0x90   : > { %v517_v49 = vadd.f32 %v1370_v15, %v482_v42  ;;  %710 = vst [vmem:[%s1158_s7 + $0x200] sm:$0xff] %v511_v43  ;;  %711 = vst [vmem:[%s1158_s7 + $0x208] sm:$0xff] %v512_v30 }
  0x91   : > { %712 = vst [vmem:[%s1158_s7 + $0x210] sm:$0xff] %v513_v44  ;;  %v518_v48 = vadd.f32 %v1376_v62, %v483_v45  ;;  %713 = vst [vmem:[%s1158_s7 + $0x218] sm:$0xff] %v514_v31 }
  0x92   : > { %714 = vst [vmem:[%s1158_s7 + $0x220] sm:$0xff] %v515_v46  ;;  %715 = vst [vmem:[%s1158_s7 + $0x228] sm:$0xff] %v516_v47 }
  0x93   : > { %716 = vst [vmem:[%s1158_s7 + $0x230] sm:$0xff] %v517_v49  ;;  %717 = vst [vmem:[%s1158_s7 + $0x238] sm:$0xff] %v518_v48 }
  0x94   : > { %853 = shalt.err (!%p850_p0)
}
  0x95   : > { %s854_s26 = scalar_lea.hbm %s1475_s16, 9216  ;;  %s858_s8 = scalar_lea.hbm %s1531_s2, 36864 }
  0x96   : > { %p855_p10 = scmp.ne.s32.totalorder %s1475_s16, %s854_s26  ;;  %p859_p3 = scmp.lt.u32.totalorder %s1475_s16, %s1531_s2 }
  0x97   : > { %p860_p9 = scmp.lt.u32.totalorder %s858_s8, %s854_s26  ;;  %p862_p12 = scmp.lt.u32.totalorder %s854_s26, %s1475_s16 }
  0x98   : > { %p856_p11 = pnand %p855_p10, %p1544_p2 }
  0x99   : > { %p861_p6 = por %p860_p9, %p859_p3 }
  0x9a   : > { %p857_p1 = pneg %p856_p11 }
  0x9b   : > { %p863_p4 = por %p862_p12, %p861_p6 }
  0x9d   : > { %p864_p5 = pnand %p863_p4, %p857_p1 }
  0x9f   : > { %867 = shalt.err (!%p864_p5)
}
  0xa0   : > { %s915_s29 = smov 256   ;;  %s916_s20 = smov 1024  }
  0xa1   : > { %s917_s7 = smov 16  }
  0xa2   : > { %730 = dma.vmem_to_hbm [thread:$0]  (%p1544_p2), %s1481_s13, 9216, %s1475_s16, %s545_s24, %s915_s29, %s916_s20, %s917_s7  }
  0xa3 PF: > { %p744_p7 = scmp.ge.s32.totalorder %s910_s12, 2  ;;  %s573_s14 = sand.u32 1, %s898_s9  }
  0xa4   : > { %p1545_p8 = scmp.ne.s32.totalorder %s1537_s22, 0  ;;  %s574_s28 = scalar_lea.sflag [#allocation4], %s573_s14 }
  0xa6   : > { %p740_p13 = pnand %p744_p7, %p1545_p8 }
  0xa8   : > { %893 = dma.done.wait (!%p740_p13), %s574_s28, 9216  }
  0xa9   : > { %895 = vsyncadd (!%p740_p13), %s574_s28, 4294958080  ;;  %p18_p0 = scmp.ge.s32.totalorder %s958_s15, 6   ;;  %s1546_s9 = smov %s902_s10 }
  0xaa   : > { %s1547_s10 = smov %s906_s11  ;;  %s1548_s11 = smov %s970_s18 }
  0xab   : > { %s1549_s12 = smov %s958_s15  ;;  %20 = sbr.rel (!%p18_p0) target bundleno = 7 (0x7), region = 92 }
  0xb2   :  { %579 = vsyncpa [#allocation3], 1 }
  0xb3   :  { %581 = vsyncpa [#allocation3 + $0x1], 1 }
  0xb4   :  { %582 = vsyncpa [#allocation6], 1 }
  0xb5   :  { %584 = vsyncpa [#allocation6 + $0x1], 1 }
  0xb6   :  { %585 = vsyncpa [#allocation4], 1 }
  0xb7   :  { %587 = vsyncpa [#allocation4 + $0x1], 1 }

</bundles_post_ra>
